<compile_context>
chip_gen: v7x
topology: tpu7x:2x2x1
jax: 0.10.0
libtpu: 0.0.40
codegen_flags: <defaults>
</compile_context>

<pallas_src>
import functools

import jax
import jax.numpy as jnp
from jax.experimental import pallas as pl
from jax.experimental.pallas import tpu as pltpu


def _block_local_kernel(x_ref, w1_ref, w2_ref, sb_ref, o_ref,
                        pbuf_ref, patches_ref, *, H, W):
    """Fused BlockLocal forward for one image (one grid step).

    x_ref:       (1, C, H*W)    input image, spatial flattened onto lanes
    w1_ref/w2_ref: (C, 9*C)     conv weights, rows = Cout, cols = (dh, dw, cin)
    sb_ref:      (C, 2)         folded BN: col 0 = scale, col 1 = bias
    o_ref:       (1, C, H*W)    output
    pbuf_ref:    (C, HW+2W+2)   flat zero-haloed activation buffer (VMEM)
    patches_ref: (9*C, H*W)     im2col patch matrix (VMEM)
    """
    C = x_ref.shape[1]
    HW = H * W
    OFF = W + 1                       # flat index of pixel (0, 0) inside pbuf
    PADLEN = HW + 2 * W + 2

    x = x_ref[0].astype(jnp.float32)              # (C, HW) lane-dense
    scale = sb_ref[:, 0:1]                        # (C, 1)
    bias = sb_ref[:, 1:2]                         # (C, 1)

    # Column index of every flat padded-buffer position: col(q) = (q - OFF) mod W.
    q = jax.lax.broadcasted_iota(jnp.int32, (1, PADLEN), 1)
    col = (q + (W - 1)) % W
    not_last_col = col != (W - 1)     # keep-mask for horizontal offset -1 taps
    not_first_col = col != 0          # keep-mask for horizontal offset +1 taps

    # Zero the halo once; only the interior is rewritten per conv.
    pbuf_ref[...] = jnp.zeros((C, PADLEN), jnp.float32)

    def conv_bn(act, w_ref, *, relu, residual=None):
        # act: (C, HW) f32 input activation of this conv.
        pbuf_ref[:, OFF:OFF + HW] = act
        pbuf = pbuf_ref[...]
        # One pre-masked copy per horizontal shift direction (source-column
        # masking is equivalent to zero padding in W for that shift).
        srcs = (jnp.where(not_last_col, pbuf, 0.0),   # dw offset -1
                pbuf,                                  # dw offset  0
                jnp.where(not_first_col, pbuf, 0.0))   # dw offset +1

        # im2col: 9 lane-shifted views of the padded buffer -> (9*C, HW).
        t = 0
        for dh in range(3):
            for dw in range(3):
                s = dh * W + dw                        # lane offset of this tap
                patches_ref[t * C:(t + 1) * C, :] = srcs[dw][:, s:s + HW]
                t += 1

        # Single MXU matmul over all 9 taps and all input channels (K = 9*C).
        y = jnp.dot(w_ref[...], patches_ref[...],
                    preferred_element_type=jnp.float32)        # (C, HW)
        y = y * scale + bias                                   # fused BN affine
        if residual is not None:
            y = y + residual
        if relu:
            y = jnp.maximum(y, 0.0)
        return y

    # relu(bn2(conv1(x)))
    y = conv_bn(x, w1_ref, relu=True)
    # relu(bn2(conv2(y)) + identity)
    y = conv_bn(y, w2_ref, relu=True, residual=x)

    o_ref[0] = y.astype(o_ref.dtype)


def block_local_forward(x_nchw, params):
    """Full BlockLocal forward. Input/output are NCHW like the PyTorch module."""
    N, C, H, W = x_nchw.shape
    HW = H * W
    PADLEN = HW + 2 * W + 2

    # Residual path with i_downsample=None, stride=1 requires Cin == Cout.
    assert params["w1"].shape == (3, 3, C, C)
    assert params["w2"].shape == (3, 3, C, C)

    def to_w2d(w_hwio):
        # (3,3,Cin,Cout) -> (Cout, 9*Cin) with row order (dh, dw, cin),
        # matching the im2col patch-row order built inside the kernel.
        return jnp.transpose(w_hwio, (3, 0, 1, 2)).reshape(C, 9 * C).astype(jnp.float32)

    w1 = to_w2d(params["w1"])
    w2 = to_w2d(params["w2"])
    sb = jnp.stack([params["bn2_scale"], params["bn2_bias"]],
                   axis=1).astype(jnp.float32)                 # (C, 2)

    # Free reshape: keep NCHW, put spatial (H*W) on the lane axis.
    x_flat = x_nchw.reshape(N, C, HW)

    kernel = functools.partial(_block_local_kernel, H=H, W=W)

    out = pl.pallas_call(
        kernel,
        out_shape=jax.ShapeDtypeStruct((N, C, HW), x_nchw.dtype),
        grid=(N,),
        in_specs=[
            pl.BlockSpec((1, C, HW), lambda n: (n, 0, 0)),
            pl.BlockSpec((C, 9 * C), lambda n: (0, 0)),
            pl.BlockSpec((C, 9 * C), lambda n: (0, 0)),
            pl.BlockSpec((C, 2), lambda n: (0, 0)),
        ],
        out_specs=pl.BlockSpec((1, C, HW), lambda n: (n, 0, 0)),
        scratch_shapes=[
            pltpu.VMEM((C, PADLEN), jnp.float32),     # flat zero-haloed buffer
            pltpu.VMEM((9 * C, HW), jnp.float32),     # im2col patch matrix
        ],
        compiler_params=pltpu.CompilerParams(
            dimension_semantics=("parallel",)),
    )(x_flat, w1, w2, sb)

    return out.reshape(N, C, H, W)


def _reference_forward(x_nchw, params):
    """Plain-JAX reference (lax conv) for correctness checking."""
    dn = jax.lax.conv_dimension_numbers(x_nchw.shape,
                                        (1, 1, 3, 3), ("NCHW", "OIHW", "NCHW"))

    def conv(x, w_hwio):
        w_oihw = jnp.transpose(w_hwio, (3, 2, 0, 1))
        return jax.lax.conv_general_dilated(
            x, w_oihw, window_strides=(1, 1), padding=((1, 1), (1, 1)),
            dimension_numbers=dn)

    def bn(x):
        s = params["bn2_scale"].reshape(1, -1, 1, 1)
        b = params["bn2_bias"].reshape(1, -1, 1, 1)
        return x * s + b

    y = jax.nn.relu(bn(conv(x_nchw, params["w1"])))
    y = bn(conv(y, params["w2"]))
    return jax.nn.relu(y + x_nchw)


if __name__ == "__main__":
    key = jax.random.PRNGKey(0)
    k_x, k_w1, k_w2, k_g, k_b, k_m, k_v = jax.random.split(key, 7)

    N, C, H, W = 2, 4, 16, 16      # in_channels == out_channels, stride = 1
    eps = 1e-5

    x = jax.random.normal(k_x, (N, C, H, W), jnp.float32)

    # Conv weights (HWIO), deterministic init.
    w1 = jax.random.normal(k_w1, (3, 3, C, C), jnp.float32) * 0.1
    w2 = jax.random.normal(k_w2, (3, 3, C, C), jnp.float32) * 0.1

    # BatchNorm2d(out_channels) parameters, folded into scale/bias.
    gamma = 1.0 + 0.1 * jax.random.normal(k_g, (C,), jnp.float32)
    beta = 0.1 * jax.random.normal(k_b, (C,), jnp.float32)
    running_mean = 0.1 * jax.random.normal(k_m, (C,), jnp.float32)
    running_var = jax.random.uniform(k_v, (C,), jnp.float32,
                                     minval=0.5, maxval=1.5)
    bn2_scale = gamma / jnp.sqrt(running_var + eps)
    bn2_bias = beta - running_mean * bn2_scale

    params = {"w1": w1, "w2": w2, "bn2_scale": bn2_scale, "bn2_bias": bn2_bias}

    out = block_local_forward(x, params)
    out = jax.block_until_ready(out)

    ref = _reference_forward(x, params)
    assert out.shape == (N, C, H, W)
    assert jnp.allclose(out, ref, atol=1e-4, rtol=1e-4)

    print("KERNEL_OK")
</pallas_src>

<mosaic_0001>
module attributes {stable_mosaic.version = 11 : i64} {
  func.func @_block_local_kernel(%arg0: i32, %arg1: memref<1x4x256xf32, #tpu.memory_space<vmem>>, %arg2: memref<4x36xf32, #tpu.memory_space<vmem>>, %arg3: memref<4x36xf32, #tpu.memory_space<vmem>>, %arg4: memref<4x2xf32, #tpu.memory_space<vmem>>, %arg5: memref<1x4x256xf32, #tpu.memory_space<vmem>>, %arg6: memref<4x290xf32, #tpu.memory_space<vmem>>, %arg7: memref<36x256xf32, #tpu.memory_space<vmem>>) attributes {dimension_semantics = [#tpu.dimension_semantics<parallel>], iteration_bounds = array<i64: 2>, scalar_prefetch = 0 : i64, scratch_operands = 2 : i64, tpu.core_type = #tpu.core_type<tc>, window_params = [{transform_indices = @transform_0, window_bounds = array<i64: 1, 4, 256>}, {pipeline_mode = #tpu.pipeline_mode<synchronous>, transform_indices = @transform_1, window_bounds = array<i64: 4, 36>}, {pipeline_mode = #tpu.pipeline_mode<synchronous>, transform_indices = @transform_2, window_bounds = array<i64: 4, 36>}, {pipeline_mode = #tpu.pipeline_mode<synchronous>, transform_indices = @transform_3, window_bounds = array<i64: 4, 2>}, {transform_indices = @transform_4, window_bounds = array<i64: 1, 4, 256>}]} {
    %c0 = arith.constant 0 : index
    %c0_0 = arith.constant 0 : index
    %c0_1 = arith.constant 0 : index
    %0 = vector.load %arg1[%c0, %c0_0, %c0_1] : memref<1x4x256xf32, #tpu.memory_space<vmem>>, vector<1x4x256xf32>
    %1 = vector.shape_cast %0 : vector<1x4x256xf32> to vector<4x256xf32>
    %c0_2 = arith.constant 0 : index
    %c0_3 = arith.constant 0 : index
    %2 = vector.load %arg4[%c0_2, %c0_3] : memref<4x2xf32, #tpu.memory_space<vmem>>, vector<4x1xf32>
    %c0_4 = arith.constant 0 : index
    %c1 = arith.constant 1 : index
    %3 = vector.load %arg4[%c0_4, %c1] : memref<4x2xf32, #tpu.memory_space<vmem>>, vector<4x1xf32>
    %4 = tpu.iota {dimensions = array<i32: 1>} : vector<1x290xi32>
    %c15_i32 = arith.constant 15 : i32
    %5 = vector.broadcast %c15_i32 : i32 to vector<1x290xi32>
    %6 = arith.addi %4, %5 : vector<1x290xi32>
    %c16_i32 = arith.constant 16 : i32
    %c0_i32 = arith.constant 0 : i32
    %7 = arith.cmpi eq, %c16_i32, %c0_i32 : i32
    %c1_i32 = arith.constant 1 : i32
    %8 = arith.select %7, %c1_i32, %c16_i32 : i32
    %9 = vector.broadcast %8 : i32 to vector<1x290xi32>
    %10 = arith.remsi %6, %9 : vector<1x290xi32>
    %c0_i32_5 = arith.constant 0 : i32
    %11 = vector.broadcast %c0_i32_5 : i32 to vector<1x290xi32>
    %12 = arith.cmpi ne, %10, %11 : vector<1x290xi32>
    %c0_i32_6 = arith.constant 0 : i32
    %13 = vector.broadcast %c0_i32_6 : i32 to vector<1x290xi32>
    %14 = arith.cmpi slt, %10, %13 : vector<1x290xi32>
    %c0_i32_7 = arith.constant 0 : i32
    %15 = arith.cmpi slt, %8, %c0_i32_7 : i32
    %16 = vector.broadcast %15 : i1 to vector<1x290xi1>
    %17 = vector.broadcast %16 : vector<1x290xi1> to vector<1x290xi1>
    %18 = arith.xori %14, %17 : vector<1x290xi1>
    %19 = arith.andi %18, %12 : vector<1x290xi1>
    %20 = vector.broadcast %8 : i32 to vector<1x290xi32>
    %21 = arith.addi %10, %20 : vector<1x290xi32>
    %22 = arith.select %19, %21, %10 : vector<1x290xi1>, vector<1x290xi32>
    %c15_i32_8 = arith.constant 15 : i32
    %23 = vector.broadcast %c15_i32_8 : i32 to vector<1x290xi32>
    %24 = arith.cmpi ne, %22, %23 : vector<1x290xi32>
    %c0_i32_9 = arith.constant 0 : i32
    %25 = vector.broadcast %c0_i32_9 : i32 to vector<1x290xi32>
    %26 = arith.cmpi ne, %22, %25 : vector<1x290xi32>
    %cst = arith.constant 0.000000e+00 : f32
    %27 = vector.broadcast %cst : f32 to vector<4x290xf32>
    %c0_10 = arith.constant 0 : index
    %c0_11 = arith.constant 0 : index
    %28 = vector.load %arg6[%c0_10, %c0_11] : memref<4x290xf32, #tpu.memory_space<vmem>>, vector<4x290xf32>
    tpu.vector_store %arg6[%c0_10, %c0_11], %27 {strides = array<i32>} : memref<4x290xf32, #tpu.memory_space<vmem>>, vector<4x290xf32>,
    %c0_12 = arith.constant 0 : index
    %c17 = arith.constant 17 : index
    %29 = vector.load %arg6[%c0_12, %c17] : memref<4x290xf32, #tpu.memory_space<vmem>>, vector<4x256xf32>
    tpu.vector_store %arg6[%c0_12, %c17], %1 {strides = array<i32>} : memref<4x290xf32, #tpu.memory_space<vmem>>, vector<4x256xf32>,
    %c0_13 = arith.constant 0 : index
    %c0_14 = arith.constant 0 : index
    %30 = vector.load %arg6[%c0_13, %c0_14] : memref<4x290xf32, #tpu.memory_space<vmem>>, vector<4x290xf32>
    %cst_15 = arith.constant 0.000000e+00 : f32
    %31 = vector.shape_cast %24 : vector<1x290xi1> to vector<1x290xi1>
    %32 = vector.broadcast %31 : vector<1x290xi1> to vector<4x290xi1>
    %33 = vector.broadcast %cst_15 : f32 to vector<4x290xf32>
    %34 = arith.select %32, %30, %33 : vector<4x290xi1>, vector<4x290xf32>
    %cst_16 = arith.constant 0.000000e+00 : f32
    %35 = vector.shape_cast %26 : vector<1x290xi1> to vector<1x290xi1>
    %36 = vector.broadcast %35 : vector<1x290xi1> to vector<4x290xi1>
    %37 = vector.broadcast %cst_16 : f32 to vector<4x290xf32>
    %38 = arith.select %36, %30, %37 : vector<4x290xi1>, vector<4x290xf32>
    %39 = vector.extract_strided_slice %34 {offsets = [0, 0], sizes = [4, 256], strides = [1, 1]} : vector<4x290xf32> to vector<4x256xf32>
    %c0_17 = arith.constant 0 : index
    %c0_18 = arith.constant 0 : index
    %40 = vector.load %arg7[%c0_17, %c0_18] : memref<36x256xf32, #tpu.memory_space<vmem>>, vector<4x256xf32>
    tpu.vector_store %arg7[%c0_17, %c0_18], %39 {strides = array<i32>} : memref<36x256xf32, #tpu.memory_space<vmem>>, vector<4x256xf32>,
    %41 = vector.extract_strided_slice %30 {offsets = [0, 1], sizes = [4, 256], strides = [1, 1]} : vector<4x290xf32> to vector<4x256xf32>
    %c4 = arith.constant 4 : index
    %c0_19 = arith.constant 0 : index
    %42 = vector.load %arg7[%c4, %c0_19] : memref<36x256xf32, #tpu.memory_space<vmem>>, vector<4x256xf32>
    tpu.vector_store %arg7[%c4, %c0_19], %41 {strides = array<i32>} : memref<36x256xf32, #tpu.memory_space<vmem>>, vector<4x256xf32>,
    %43 = vector.extract_strided_slice %38 {offsets = [0, 2], sizes = [4, 256], strides = [1, 1]} : vector<4x290xf32> to vector<4x256xf32>
    %c8 = arith.constant 8 : index
    %c0_20 = arith.constant 0 : index
    %44 = vector.load %arg7[%c8, %c0_20] : memref<36x256xf32, #tpu.memory_space<vmem>>, vector<4x256xf32>
    tpu.vector_store %arg7[%c8, %c0_20], %43 {strides = array<i32>} : memref<36x256xf32, #tpu.memory_space<vmem>>, vector<4x256xf32>,
    %45 = vector.extract_strided_slice %34 {offsets = [0, 16], sizes = [4, 256], strides = [1, 1]} : vector<4x290xf32> to vector<4x256xf32>
    %c12 = arith.constant 12 : index
    %c0_21 = arith.constant 0 : index
    %46 = vector.load %arg7[%c12, %c0_21] : memref<36x256xf32, #tpu.memory_space<vmem>>, vector<4x256xf32>
    tpu.vector_store %arg7[%c12, %c0_21], %45 {strides = array<i32>} : memref<36x256xf32, #tpu.memory_space<vmem>>, vector<4x256xf32>,
    %47 = vector.extract_strided_slice %30 {offsets = [0, 17], sizes = [4, 256], strides = [1, 1]} : vector<4x290xf32> to vector<4x256xf32>
    %c16 = arith.constant 16 : index
    %c0_22 = arith.constant 0 : index
    %48 = vector.load %arg7[%c16, %c0_22] : memref<36x256xf32, #tpu.memory_space<vmem>>, vector<4x256xf32>
    tpu.vector_store %arg7[%c16, %c0_22], %47 {strides = array<i32>} : memref<36x256xf32, #tpu.memory_space<vmem>>, vector<4x256xf32>,
    %49 = vector.extract_strided_slice %38 {offsets = [0, 18], sizes = [4, 256], strides = [1, 1]} : vector<4x290xf32> to vector<4x256xf32>
    %c20 = arith.constant 20 : index
    %c0_23 = arith.constant 0 : index
    %50 = vector.load %arg7[%c20, %c0_23] : memref<36x256xf32, #tpu.memory_space<vmem>>, vector<4x256xf32>
    tpu.vector_store %arg7[%c20, %c0_23], %49 {strides = array<i32>} : memref<36x256xf32, #tpu.memory_space<vmem>>, vector<4x256xf32>,
    %51 = vector.extract_strided_slice %34 {offsets = [0, 32], sizes = [4, 256], strides = [1, 1]} : vector<4x290xf32> to vector<4x256xf32>
    %c24 = arith.constant 24 : index
    %c0_24 = arith.constant 0 : index
    %52 = vector.load %arg7[%c24, %c0_24] : memref<36x256xf32, #tpu.memory_space<vmem>>, vector<4x256xf32>
    tpu.vector_store %arg7[%c24, %c0_24], %51 {strides = array<i32>} : memref<36x256xf32, #tpu.memory_space<vmem>>, vector<4x256xf32>,
    %53 = vector.extract_strided_slice %30 {offsets = [0, 33], sizes = [4, 256], strides = [1, 1]} : vector<4x290xf32> to vector<4x256xf32>
    %c28 = arith.constant 28 : index
    %c0_25 = arith.constant 0 : index
    %54 = vector.load %arg7[%c28, %c0_25] : memref<36x256xf32, #tpu.memory_space<vmem>>, vector<4x256xf32>
    tpu.vector_store %arg7[%c28, %c0_25], %53 {strides = array<i32>} : memref<36x256xf32, #tpu.memory_space<vmem>>, vector<4x256xf32>,
    %55 = vector.extract_strided_slice %38 {offsets = [0, 34], sizes = [4, 256], strides = [1, 1]} : vector<4x290xf32> to vector<4x256xf32>
    %c32 = arith.constant 32 : index
    %c0_26 = arith.constant 0 : index
    %56 = vector.load %arg7[%c32, %c0_26] : memref<36x256xf32, #tpu.memory_space<vmem>>, vector<4x256xf32>
    tpu.vector_store %arg7[%c32, %c0_26], %55 {strides = array<i32>} : memref<36x256xf32, #tpu.memory_space<vmem>>, vector<4x256xf32>,
    %c0_27 = arith.constant 0 : index
    %c0_28 = arith.constant 0 : index
    %57 = vector.load %arg2[%c0_27, %c0_28] : memref<4x36xf32, #tpu.memory_space<vmem>>, vector<4x36xf32>
    %c0_29 = arith.constant 0 : index
    %c0_30 = arith.constant 0 : index
    %58 = vector.load %arg7[%c0_29, %c0_30] : memref<36x256xf32, #tpu.memory_space<vmem>>, vector<36x256xf32>
    %cst_31 = arith.constant dense<0.000000e+00> : vector<4x256xf32>
    %59 = tpu.matmul %57, %58, %cst_31 {dimension_numbers = #tpu.dot_dimension_numbers<[1], [0], [0], [1], [0, 0, 1, 1], [], []>} : vector<4x36xf32>, vector<36x256xf32>, vector<4x256xf32> -> vector<4x256xf32>
    %60 = vector.broadcast %2 : vector<4x1xf32> to vector<4x256xf32>
    %61 = arith.mulf %59, %60 : vector<4x256xf32>
    %62 = vector.broadcast %3 : vector<4x1xf32> to vector<4x256xf32>
    %63 = arith.addf %61, %62 : vector<4x256xf32>
    %cst_32 = arith.constant 0.000000e+00 : f32
    %64 = vector.broadcast %cst_32 : f32 to vector<4x256xf32>
    %65 = arith.maximumf %63, %64 : vector<4x256xf32>
    %c0_33 = arith.constant 0 : index
    %c17_34 = arith.constant 17 : index
    %66 = vector.load %arg6[%c0_33, %c17_34] : memref<4x290xf32, #tpu.memory_space<vmem>>, vector<4x256xf32>
    tpu.vector_store %arg6[%c0_33, %c17_34], %65 {strides = array<i32>} : memref<4x290xf32, #tpu.memory_space<vmem>>, vector<4x256xf32>,
    %c0_35 = arith.constant 0 : index
    %c0_36 = arith.constant 0 : index
    %67 = vector.load %arg6[%c0_35, %c0_36] : memref<4x290xf32, #tpu.memory_space<vmem>>, vector<4x290xf32>
    %cst_37 = arith.constant 0.000000e+00 : f32
    %68 = vector.shape_cast %24 : vector<1x290xi1> to vector<1x290xi1>
    %69 = vector.broadcast %68 : vector<1x290xi1> to vector<4x290xi1>
    %70 = vector.broadcast %cst_37 : f32 to vector<4x290xf32>
    %71 = arith.select %69, %67, %70 : vector<4x290xi1>, vector<4x290xf32>
    %cst_38 = arith.constant 0.000000e+00 : f32
    %72 = vector.shape_cast %26 : vector<1x290xi1> to vector<1x290xi1>
    %73 = vector.broadcast %72 : vector<1x290xi1> to vector<4x290xi1>
    %74 = vector.broadcast %cst_38 : f32 to vector<4x290xf32>
    %75 = arith.select %73, %67, %74 : vector<4x290xi1>, vector<4x290xf32>
    %76 = vector.extract_strided_slice %71 {offsets = [0, 0], sizes = [4, 256], strides = [1, 1]} : vector<4x290xf32> to vector<4x256xf32>
    %c0_39 = arith.constant 0 : index
    %c0_40 = arith.constant 0 : index
    %77 = vector.load %arg7[%c0_39, %c0_40] : memref<36x256xf32, #tpu.memory_space<vmem>>, vector<4x256xf32>
    tpu.vector_store %arg7[%c0_39, %c0_40], %76 {strides = array<i32>} : memref<36x256xf32, #tpu.memory_space<vmem>>, vector<4x256xf32>,
    %78 = vector.extract_strided_slice %67 {offsets = [0, 1], sizes = [4, 256], strides = [1, 1]} : vector<4x290xf32> to vector<4x256xf32>
    %c4_41 = arith.constant 4 : index
    %c0_42 = arith.constant 0 : index
    %79 = vector.load %arg7[%c4_41, %c0_42] : memref<36x256xf32, #tpu.memory_space<vmem>>, vector<4x256xf32>
    tpu.vector_store %arg7[%c4_41, %c0_42], %78 {strides = array<i32>} : memref<36x256xf32, #tpu.memory_space<vmem>>, vector<4x256xf32>,
    %80 = vector.extract_strided_slice %75 {offsets = [0, 2], sizes = [4, 256], strides = [1, 1]} : vector<4x290xf32> to vector<4x256xf32>
    %c8_43 = arith.constant 8 : index
    %c0_44 = arith.constant 0 : index
    %81 = vector.load %arg7[%c8_43, %c0_44] : memref<36x256xf32, #tpu.memory_space<vmem>>, vector<4x256xf32>
    tpu.vector_store %arg7[%c8_43, %c0_44], %80 {strides = array<i32>} : memref<36x256xf32, #tpu.memory_space<vmem>>, vector<4x256xf32>,
    %82 = vector.extract_strided_slice %71 {offsets = [0, 16], sizes = [4, 256], strides = [1, 1]} : vector<4x290xf32> to vector<4x256xf32>
    %c12_45 = arith.constant 12 : index
    %c0_46 = arith.constant 0 : index
    %83 = vector.load %arg7[%c12_45, %c0_46] : memref<36x256xf32, #tpu.memory_space<vmem>>, vector<4x256xf32>
    tpu.vector_store %arg7[%c12_45, %c0_46], %82 {strides = array<i32>} : memref<36x256xf32, #tpu.memory_space<vmem>>, vector<4x256xf32>,
    %84 = vector.extract_strided_slice %67 {offsets = [0, 17], sizes = [4, 256], strides = [1, 1]} : vector<4x290xf32> to vector<4x256xf32>
    %c16_47 = arith.constant 16 : index
    %c0_48 = arith.constant 0 : index
    %85 = vector.load %arg7[%c16_47, %c0_48] : memref<36x256xf32, #tpu.memory_space<vmem>>, vector<4x256xf32>
    tpu.vector_store %arg7[%c16_47, %c0_48], %84 {strides = array<i32>} : memref<36x256xf32, #tpu.memory_space<vmem>>, vector<4x256xf32>,
    %86 = vector.extract_strided_slice %75 {offsets = [0, 18], sizes = [4, 256], strides = [1, 1]} : vector<4x290xf32> to vector<4x256xf32>
    %c20_49 = arith.constant 20 : index
    %c0_50 = arith.constant 0 : index
    %87 = vector.load %arg7[%c20_49, %c0_50] : memref<36x256xf32, #tpu.memory_space<vmem>>, vector<4x256xf32>
    tpu.vector_store %arg7[%c20_49, %c0_50], %86 {strides = array<i32>} : memref<36x256xf32, #tpu.memory_space<vmem>>, vector<4x256xf32>,
    %88 = vector.extract_strided_slice %71 {offsets = [0, 32], sizes = [4, 256], strides = [1, 1]} : vector<4x290xf32> to vector<4x256xf32>
    %c24_51 = arith.constant 24 : index
    %c0_52 = arith.constant 0 : index
    %89 = vector.load %arg7[%c24_51, %c0_52] : memref<36x256xf32, #tpu.memory_space<vmem>>, vector<4x256xf32>
    tpu.vector_store %arg7[%c24_51, %c0_52], %88 {strides = array<i32>} : memref<36x256xf32, #tpu.memory_space<vmem>>, vector<4x256xf32>,
    %90 = vector.extract_strided_slice %67 {offsets = [0, 33], sizes = [4, 256], strides = [1, 1]} : vector<4x290xf32> to vector<4x256xf32>
    %c28_53 = arith.constant 28 : index
    %c0_54 = arith.constant 0 : index
    %91 = vector.load %arg7[%c28_53, %c0_54] : memref<36x256xf32, #tpu.memory_space<vmem>>, vector<4x256xf32>
    tpu.vector_store %arg7[%c28_53, %c0_54], %90 {strides = array<i32>} : memref<36x256xf32, #tpu.memory_space<vmem>>, vector<4x256xf32>,
    %92 = vector.extract_strided_slice %75 {offsets = [0, 34], sizes = [4, 256], strides = [1, 1]} : vector<4x290xf32> to vector<4x256xf32>
    %c32_55 = arith.constant 32 : index
    %c0_56 = arith.constant 0 : index
    %93 = vector.load %arg7[%c32_55, %c0_56] : memref<36x256xf32, #tpu.memory_space<vmem>>, vector<4x256xf32>
    tpu.vector_store %arg7[%c32_55, %c0_56], %92 {strides = array<i32>} : memref<36x256xf32, #tpu.memory_space<vmem>>, vector<4x256xf32>,
    %c0_57 = arith.constant 0 : index
    %c0_58 = arith.constant 0 : index
    %94 = vector.load %arg3[%c0_57, %c0_58] : memref<4x36xf32, #tpu.memory_space<vmem>>, vector<4x36xf32>
    %c0_59 = arith.constant 0 : index
    %c0_60 = arith.constant 0 : index
    %95 = vector.load %arg7[%c0_59, %c0_60] : memref<36x256xf32, #tpu.memory_space<vmem>>, vector<36x256xf32>
    %cst_61 = arith.constant dense<0.000000e+00> : vector<4x256xf32>
    %96 = tpu.matmul %94, %95, %cst_61 {dimension_numbers = #tpu.dot_dimension_numbers<[1], [0], [0], [1], [0, 0, 1, 1], [], []>} : vector<4x36xf32>, vector<36x256xf32>, vector<4x256xf32> -> vector<4x256xf32>
    %97 = vector.broadcast %2 : vector<4x1xf32> to vector<4x256xf32>
    %98 = arith.mulf %96, %97 : vector<4x256xf32>
    %99 = vector.broadcast %3 : vector<4x1xf32> to vector<4x256xf32>
    %100 = arith.addf %98, %99 : vector<4x256xf32>
    %101 = arith.addf %100, %1 : vector<4x256xf32>
    %cst_62 = arith.constant 0.000000e+00 : f32
    %102 = vector.broadcast %cst_62 : f32 to vector<4x256xf32>
    %103 = arith.maximumf %101, %102 : vector<4x256xf32>
    %c0_63 = arith.constant 0 : index
    %c0_64 = arith.constant 0 : index
    %c0_65 = arith.constant 0 : index
    %104 = vector.load %arg5[%c0_63, %c0_64, %c0_65] : memref<1x4x256xf32, #tpu.memory_space<vmem>>, vector<1x4x256xf32>
    %105 = vector.shape_cast %104 : vector<1x4x256xf32> to vector<4x256xf32>
    %106 = vector.shape_cast %103 : vector<4x256xf32> to vector<1x4x256xf32>
    tpu.vector_store %arg5[%c0_63, %c0_64, %c0_65], %106 {strides = array<i32>} : memref<1x4x256xf32, #tpu.memory_space<vmem>>, vector<1x4x256xf32>,
    return
  }
  func.func @transform_0(%arg0: i32) -> (i32, i32, i32) {
    %c0_i32 = arith.constant 0 : i32
    %c0_i32_0 = arith.constant 0 : i32
    %c0_i32_1 = arith.constant 0 : i32
    return %arg0, %c0_i32, %c0_i32_0 : i32, i32, i32
  }
  func.func @transform_1(%arg0: i32) -> (i32, i32) {
    %c0_i32 = arith.constant 0 : i32
    %c0_i32_0 = arith.constant 0 : i32
    %c0_i32_1 = arith.constant 0 : i32
    return %c0_i32, %c0_i32_0 : i32, i32
  }
  func.func @transform_2(%arg0: i32) -> (i32, i32) {
    %c0_i32 = arith.constant 0 : i32
    %c0_i32_0 = arith.constant 0 : i32
    %c0_i32_1 = arith.constant 0 : i32
    return %c0_i32, %c0_i32_0 : i32, i32
  }
  func.func @transform_3(%arg0: i32) -> (i32, i32) {
    %c0_i32 = arith.constant 0 : i32
    %c0_i32_0 = arith.constant 0 : i32
    %c0_i32_1 = arith.constant 0 : i32
    return %c0_i32, %c0_i32_0 : i32, i32
  }
  func.func @transform_4(%arg0: i32) -> (i32, i32, i32) {
    %c0_i32 = arith.constant 0 : i32
    %c0_i32_0 = arith.constant 0 : i32
    %c0_i32_1 = arith.constant 0 : i32
    return %arg0, %c0_i32, %c0_i32_0 : i32, i32, i32
  }
}

</mosaic_0001>

<bundles_post_ra>
// kernel: tpu_custom_call.1
= control target key start
LH: loop header
LB: loop body
LE: loop exit
PB: predicated region body
PF: predicated region fallthrough
CT: control target
= control target key end

     0   :  { %9 = vsyncpa [#allocation5], 0  ;;  %s1442_s0 = inlined_call_operand.hbm [shape: f32[2,4,256], index: 0, kind: input, shape index: {}]   ;;  %s1443_s1 = inlined_call_operand.vmem [shape: f32[4,36], index: 1, kind: input, shape index: {}]   ;;  %s1444_s2 = inlined_call_operand.vmem [shape: f32[4,36], index: 2, kind: input, shape index: {}]   ;;  %s1445_s3 = inlined_call_operand.vmem [shape: f32[4,2], index: 3, kind: input, shape index: {}]   ;;  %s1446_s4 = inlined_call_operand.hbm [shape: f32[2,4,256], index: 4, kind: output, shape index: {}]  }
   0x1   :  { %11 = vsyncpa [#allocation5 + $0x1], 0 }
   0x2   :  { %12 = vsyncpa [#allocation6], 0 }
   0x3   :  { %14 = vsyncpa [#allocation6 + $0x1], 0  ;;  %s1102_s15 = smov 0   ;;  %s1104_s16 = smov 0  }
   0x4   :  { %s1106_s17 = smov 0   ;;  %s1108_s18 = smov 0  }
   0x5 LB: > { %s1123_s19 = sadd.s32 4294967295, %s1061_s18   ;;  %s860_s20 = sadd.s32 4294967294, %s1061_s18   ;;  %s1061_s18 = sphi %s1108_s18, %s1484_s18   ;;  %s1057_s17 = sphi %s1106_s17, %s1483_s17   ;;  %s1053_s16 = sphi %s1104_s16, %s1482_s16   ;;  %s1049_s15 = sphi %s1102_s15, %s1481_s15  }
   0x6   : > { %s1127_s21 = sadd.s32 1, %s1061_s18   ;;  %s27_s22 = sadd.s32 1, %s1057_s17 }
   0x7   : > { %s24_s23 = ssub.s32 %s1061_s18, %s1127_s21  ;;  %p34_p0 = scmp.ne.s32.totalorder %s1057_s17, %s1053_s16 }
   0x8   : > { %p25_p1 = scmp.eq.s32.totalorder %s24_s23, 0  ;;  %p35_p2 = scmp.eq.s32.totalorder %s1061_s18, 0 }
   0x9   : > { %p40_p3 = scmp.ne.s32.totalorder %s1053_s16, %s1049_s15  ;;  %p41_p4 = scmp.eq.s32.totalorder %s1123_s19, 0 }
   0xa   : > { %s1139_s24 = scalar_select %p25_p1, %s1057_s17, %s27_s22  }
   0xb   : > { %p1141_p5 = por %p35_p2, %p34_p0  ;;  %p1145_p6 = por %p41_p4, %p40_p3 }
   0xc   : > { %p127_p7 = scmp.eq.s32.totalorder %s1123_s19, 1  ;;  %p133_p8 = scmp.eq.s32.totalorder %s860_s20, 1 }
   0xd   : > { %p910_p10 = scmp.lt.s32.totalorder %s1061_s18, 2  ;;  %s162_s29 = sand.u32 1, %s1057_s17  }
   0xe   : > { %p1152_p11 = por %p127_p7, %p34_p0  ;;  %p1156_p12 = por %p133_p8, %p40_p3 }
   0xf   : > { %s880_s30 = sshll.u32 %s1061_s18, 7  ;;  %s863_s5 = sshll.u32 %s162_s29, 3 }
  0x10   : > { %s1453_s27 = scalar_select %p1152_p11, 1, 0 }
  0x11   : > { %s1454_s28 = scalar_select %p1156_p12, 1, 0 }
  0x12   : > { %s1165_s8 = scalar_lea.hbm %s1442_s0, %s880_s30  ;;  %s166_s9 = scalar_lea.vmem [#allocation4], %s863_s5 }
  0x13   : > { %s174_s10 = sshll.u32 %s166_s9, 4  ;;  %p1169_p13 = pnand %p910_p10, %p1141_p5  ;;  %s1173_s10 = int_to_ptr.vmem [resolvable:$true] %s174_s10 }
  0x14   : > { %s163_s12 = scalar_lea.sflag [#allocation5], %s162_s29  ;;  %s965_s13 = scalar_lea.hbm %s1165_s8, 128 }
  0x15   : > { %p966_p2 = scmp.ne.s32.totalorder %s1165_s8, %s965_s13  ;;  %p967_p3 = pneg %p1169_p13 }
  0x16   : > { %s970_s22 = scalar_lea.hbm %s1442_s0, 256  ;;  %p971_p5 = scmp.lt.u32.totalorder %s1165_s8, %s1442_s0 }
  0x17   : > { %p968_p4 = pnand %p967_p3, %p966_p2  ;;  %p972_p8 = scmp.lt.u32.totalorder %s970_s22, %s965_s13 }
  0x18   : > { %p974_p9 = scmp.lt.u32.totalorder %s965_s13, %s1165_s8 }
  0x19   : > { %p969_p7 = pneg %p968_p4  ;;  %p973_p10 = por %p972_p8, %p971_p5 }
  0x1b   : > { %p975_p0 = por %p974_p9, %p973_p10 }
  0x1d   : > { %p976_p1 = pnand %p975_p0, %p969_p7 }
  0x1f   : > { %979 = shalt.err (!%p976_p1)
}
  0x20   : > { %s980_s29 = scalar_lea.vmem %s1173_s10, 128  ;;  %s1063_s30 = smov [#allocation4]  }
  0x21   : > { %p981_p2 = scmp.ne.s32.totalorder %s1173_s10, %s980_s29  ;;  %s985_s5 = sshll.u32 %s1063_s30, 4  ;;  %s986_s5 = int_to_ptr.vmem [resolvable:$false] %s985_s5 }
  0x22   : > { %s987_s6 = scalar_lea.vmem %s986_s5, 256  ;;  %p988_p11 = scmp.lt.s32.totalorder %s1173_s10, %s986_s5 }
  0x23   : > { %p983_p4 = pnand %p981_p2, %p967_p3  ;;  %p989_p5 = scmp.lt.s32.totalorder %s987_s6, %s980_s29 }
  0x25   : > { %p984_p12 = pneg %p983_p4  ;;  %p990_p8 = por %p989_p5, %p988_p11 }
  0x27   : > { %p991_p9 = pnand %p990_p8, %p984_p12 }
  0x29   : > { %994 = shalt.err (!%p991_p9)
}
  0x2a   : > { %905 = dma.hbm_to_vmem [thread:$0]  (!%p1169_p13), %s1165_s8, 128, %s1173_s10, %s163_s12  }
  0x2b   : > { %p1456_p0 = scmp.lt.s32.totalorder %s1061_s18, 3  ;;  %p1457_p1 = scmp.ge.s32.totalorder %s1061_s18, 1 }
  0x2d   : > { %p180_p3 = pnand %p1457_p1, %p1456_p0 }
  0x2e   : > { %s1207_s7 = sand.u32 (!%p180_p3), 1, %s1053_s16  }
  0x2f   : > { %183 = sbr.rel (%p180_p3) target bundleno = 1107 (0x453), region = 36  ;;  %s867_s9 = sshll.u32 (!%p180_p3), %s1207_s7, 3 }
  0x30   : > { %s186_s13 = scalar_lea.sflag (!%p180_p3), [#allocation5], %s1207_s7  ;;  %s189_s11 = scalar_lea.vmem (!%p180_p3), [#allocation4], %s867_s9 }
  0x36   : > { %1040 = dma.done.wait (%p1145_p6), %s186_s13, 128  }
  0x37   : > { %1042 = vsyncadd (%p1145_p6), %s186_s13, 4294967168  ;;  %vm266_vm0 = vcmask 273408   ;;  %v1064_v0 = vmov 0.0   ;;  %v1217_v1 = vld [vmem:[%s189_s11] sm:$0xff]  ;;  %s1065_s8 = smov 17   ;;  %v216_v2 = vlaneseq  ;;  %vm276_vm1 = vcmask 1043592  }
  0x38   : > { %265 = vst [vmem:[#allocation2] sm:$0xff] %v1064_v0  ;;  %267 = vst.msk [vmem:[#allocation2 + $0x8] sm:$0xf] %vm266_vm0, %v1064_v0  ;;  %512 = vmatprep.mubr.f32.mxu0 %v1064_v0  ;;  %753 = vmatprep.mubr.f32.mxu1 %v1064_v0  ;;  %vm277_vm2 = vcmask 1047556   ;;  %vm272_vm3 = vcmask 138240   ;;  %vm280_vm4 = vcmask 134144  }
  0x39   : > { %269 = vrot.lane.b32.xlu0 %v1217_v1, %s1065_s8  ;;  %v217_v3 = vand.u32 127, %v216_v2  ;;  %vm1221_vm5 = vmor %vm277_vm2, %vm276_vm1  ;;  %s1066_s26 = smov 111   ;;  %s1067_s10 = smov 127   ;;  %v1074_v39 = vmov 1   ;;  %v1075_v40 = vmov 0   ;;  %vm316_vm12 = vcmask 1039360  }
  0x3a   : > { %s1068_s12 = smov 96   ;;  %s1069_s14 = smov 126   ;;  %957 = vset.pattern.permute.xlu0 %v1074_v39  ;;  %956 = vset.pattern.permute.xlu1 %v1075_v40  ;;  %v215_v41 = vld [vmem:[%s1445_s3] sm:$0xf]  ;;  %vm406_vm13 = vcmask 777216   ;;  %vm332_vm14 = vcmask 1031168  }
  0x3b   : > { %v219_v4 = vadd.s32 256, %v217_v3  ;;  %v218_v6 = vadd.s32 128, %v217_v3  ;;  %v220_v9 = vadd.s32 15, %v217_v3  ;;  %s1070_s20 = smov 95   ;;  %s1071_s22 = smov 110   ;;  %vm364_vm15 = vcmask 908288  }
  0x3c   : > { %s1072_s23 = smov 112   ;;  %s1073_s25 = smov 94   ;;  %vm1450_vm0 = vcmask 785408   ;;  %vm1448_vm1 = vcmask 916480   ;;  %vm1449_vm2 = vcmask 900096  }
  0x3d   : > { %v222_v11 = vadd.s32 15, %v219_v4  ;;  %v221_v12 = vadd.s32 15, %v218_v6  ;;  %v227_v13 = vand.u32 15, %v220_v9  ;;  %v426_v40 = vld [vmem:[%s1443_s1] sm:$0xf]  ;;  %p1478_p11 = scmp.ne.s32.totalorder %s1453_s27, 0 }
  0x3f   : > { %v241_v14 = vand.u32 15, %v222_v11  ;;  %v234_v15 = vand.u32 15, %v221_v12  ;;  %vm1229_vm6 = vcmp.ne.s32.totalorder %v227_v13, 15  ;;  %vm1261_vm10 = vcmp.ne.s32.totalorder %v227_v13, 0 }
  0x41   : > { %vm1234_vm7 = vcmp.ne.s32.totalorder %v241_v14, 15  ;;  %vm1239_vm8 = vcmp.ne.s32.totalorder %v241_v14, 0  ;;  %vm1243_vm9 = vcmp.ne.s32.totalorder %v234_v15, 15  ;;  %vm1270_vm11 = vcmp.ne.s32.totalorder %v234_v15, 0 }
  0xab   : > { %v270_v5 = vpop.permute.xlu0 %269 }
  0xac   : > { %v271_v8 = vrot.slane %v270_v5, 4 }
  0xae   : > { %v273_v10 = vsel %vm272_vm3, %v271_v8, %v270_v5  ;;  %281 = vst.msk [vmem:[#allocation2 + $0x8] sm:$0xf] %vm280_vm4, %v271_v8 }
  0xaf   : > { %279 = vst.msk [vmem:[#allocation2] sm:$0xff] %vm1221_vm5, %v273_v10 }
  0xb5   : > { %v283_v16 = vld [vmem:[#allocation2 + $0x8] sm:$0xf] }
  0xb6   : > { %362 = vrot.lane.b32.xlu1 %v283_v16, %s1066_s26  ;;  %v282_v18 = vld [vmem:[#allocation2] sm:$0xff]  ;;  %v296_v24 = vsel %vm1234_vm7, %v283_v16, 0.0  ;;  %v305_v25 = vsel %vm1239_vm8, %v283_v16, 0.0  ;;  %v309_v27 = vcombine.low %v283_v16, %v283_v16 }
  0xb7   : > { %312 = vrot.lane.b32.xlu0 %v282_v18, %s1067_s10  ;;  %v292_v22 = vcombine.high %v282_v18, %v282_v18  ;;  %v294_v23 = vsel %vm1229_vm6, %v282_v18, 0.0  ;;  %v308_v29 = vcombine.low %v282_v18, %v282_v18  ;;  %v303_v30 = vsel %vm1261_vm10, %v282_v18, 0.0 }
  0xb8   : > { %306 = vst [vmem:[#allocation3] sm:$0xf] %v294_v23  ;;  %v373_v31 = vrot.slane %v305_v25, 4  ;;  %v344_v32 = vrot.slane %v296_v24, 4  ;;  %v342_v35 = vrot.slane %v294_v23, 4  ;;  %v371_v37 = vrot.slane %v303_v30, 4 }
  0xb9   : > { %v295_v26 = vsel %vm1243_vm9, %v292_v22, 0.0  ;;  %v304_v34 = vsel %vm1270_vm11, %v292_v22, 0.0 }
  0xba   : > { %391 = vrot.lane.b32.xlu1 %v296_v24, %s1068_s12  ;;  %307 = vst [vmem:[#allocation3 + $0x8] sm:$0xf] %v295_v26  ;;  %v343_v36 = vrot.slane %v295_v26, 4  ;;  %v372_v38 = vrot.slane %v304_v34, 4 }
  0xbb   : > { %330 = vrot.lane.b32.xlu0 %v305_v25, %s1069_s14 }
  0xbe   : > { %314 = vrot.lane.b32.xlu1 %v309_v27, %s1067_s10 }
  0xbf   : > { %402 = vrot.lane.b32.xlu0 %v282_v18, %s1070_s20 }
  0xc2   : > { %404 = vrot.lane.b32.xlu1 %v309_v27, %s1070_s20 }
  0xc3   : > { %358 = vrot.lane.b32.xlu0 %v282_v18, %s1066_s26 }
  0xc6   : > { %310 = vrot.lane.b32.xlu1 %v308_v29, %s1067_s10 }
  0xc7   : > { %326 = vrot.lane.b32.xlu0 %v303_v30, %s1069_s14 }
  0xca   : > { %378 = vrot.lane.b32.xlu1 %v373_v31, %s1071_s22 }
  0xcb   : > { %349 = vrot.lane.b32.xlu0 %v344_v32, %s1072_s23 }
  0xce   : > { %328 = vrot.lane.b32.xlu1 %v304_v34, %s1069_s14 }
  0xcf   : > { %360 = vrot.lane.b32.xlu0 %v292_v22, %s1066_s26 }
  0xd2   : > { %345 = vrot.lane.b32.xlu1 %v342_v35, %s1072_s23 }
  0xd3   : > { %389 = vrot.lane.b32.xlu0 %v295_v26, %s1068_s12 }
  0xd6   : > { %347 = vrot.lane.b32.xlu1 %v343_v36, %s1072_s23 }
  0xd7   : > { %387 = vrot.lane.b32.xlu0 %v294_v23, %s1068_s12 }
  0xda   : > { %374 = vrot.lane.b32.xlu1 %v371_v37, %s1071_s22 }
  0xdb   : > { %376 = vrot.lane.b32.xlu0 %v372_v38, %s1071_s22 }
  0xde   : > { %400 = vrot.lane.b32.xlu1 %v308_v29, %s1070_s20 }
  0xdf   : > { %415 = vrot.lane.b32.xlu0 %v304_v34, %s1073_s25 }
  0xe2   : > { %417 = vrot.lane.b32.xlu1 %v305_v25, %s1073_s25 }
  0xe3   : > { %413 = vrot.lane.b32.xlu0 %v303_v30, %s1073_s25 }
  0xe6   : > { %521 = vperm.xlu1 %956, %v215_v41  }
  0xe7   : > { %527 = vperm.xlu0 %957, %v215_v41  }
 0x128   : > { %v363_v42 = vpop.permute.xlu1 %362 }
 0x129   : > { %v313_v43 = vpop.permute.xlu0 %312 }
 0x12c   : > { %v392_v44 = vpop.permute.xlu1 %391 }
 0x12d   : > { %v331_v45 = vpop.permute.xlu0 %330 }
 0x130   : > { %v315_v46 = vpop.permute.xlu1 %314 }
 0x131   : > { %v318_v47 = vsel %vm316_vm12, %v313_v43, %v315_v46  ;;  %v403_v48 = vpop.permute.xlu0 %402 }
 0x132   : > { %322 = vst [vmem:[#allocation3 + $0x8] sm:$0xf0] %v318_v47 }
 0x134   : > { %v405_v49 = vpop.permute.xlu1 %404 }
 0x135   : > { %v408_v50 = vsel %vm406_vm13, %v403_v48, %v405_v49  ;;  %v359_v51 = vpop.permute.xlu0 %358 }
 0x136   : > { %412 = vst [vmem:[#allocation3 + $0x38] sm:$0xf0] %v408_v50 }
 0x138   : > { %v311_v52 = vpop.permute.xlu1 %310 }
 0x139   : > { %v317_v53 = vsel %vm316_vm12, %v311_v52, %v313_v43  ;;  %v327_v54 = vpop.permute.xlu0 %326  ;;  %v428_v14 = vld [vmem:[#allocation3 + $0x8] sm:$0xff] }
 0x13a   : > { %321 = vst [vmem:[#allocation3] sm:$0xf0] %v317_v53 }
 0x13c   : > { %v379_v55 = vpop.permute.xlu1 %378 }
 0x13d   : > { %v350_v56 = vpop.permute.xlu0 %349 }
 0x140   : > { %v329_v57 = vpop.permute.xlu1 %328 }
 0x141   : > { %v333_v58 = vsel %vm332_vm14, %v327_v54, %v329_v57  ;;  %v334_v59 = vsel %vm332_vm14, %v329_v57, %v331_v45  ;;  %v361_v60 = vpop.permute.xlu0 %360  ;;  %v427_v22 = vld [vmem:[#allocation3] sm:$0xff] }
 0x142   : > { %337 = vst [vmem:[#allocation3 + $0x10] sm:$0xf] %v333_v58  ;;  %338 = vst [vmem:[#allocation3 + $0x18] sm:$0xf] %v334_v59  ;;  %v365_v61 = vsel %vm364_vm15, %v359_v51, %v361_v60  ;;  %v366_v62 = vsel %vm364_vm15, %v361_v60, %v363_v42 }
 0x143   : > { %369 = vst [vmem:[#allocation3 + $0x20] sm:$0xf] %v365_v61  ;;  %370 = vst [vmem:[#allocation3 + $0x28] sm:$0xf] %v366_v62 }
 0x144   : > { %v346_v63 = vpop.permute.xlu1 %345 }
 0x145   : > { %v390_v0 = vpop.permute.xlu0 %389 }
 0x146   : > { %v395_v2 = vsel %vm1450_vm0, %v390_v0, %v392_v44 }
 0x147   : > { %399 = vst [vmem:[#allocation3 + $0x38] sm:$0xf] %v395_v2 }
 0x148   : > { %v348_v3 = vpop.permute.xlu1 %347 }
 0x149   : > { %v352_v4 = vsel %vm1448_vm1, %v346_v63, %v348_v3  ;;  %v353_v5 = vsel %vm1448_vm1, %v348_v3, %v350_v56  ;;  %v388_v6 = vpop.permute.xlu0 %387  ;;  %vm419_vm1 = vcmask 769024  }
 0x14a   : > { %356 = vst [vmem:[#allocation3 + $0x10] sm:$0xf0] %v352_v4  ;;  %357 = vst [vmem:[#allocation3 + $0x18] sm:$0xf0] %v353_v5  ;;  %v394_v8 = vsel %vm1450_vm0, %v388_v6, %v390_v0  ;;  %vm437_vm0 = vcmask 293888  }
 0x14b   : > { %398 = vst [vmem:[#allocation3 + $0x30] sm:$0xf] %v394_v8 }
 0x14c   : > { %v375_v9 = vpop.permute.xlu1 %374 }
 0x14d   : > { %v377_v10 = vpop.permute.xlu0 %376 }
 0x14e   : > { %v381_v11 = vsel %vm1449_vm2, %v375_v9, %v377_v10  ;;  %v382_v12 = vsel %vm1449_vm2, %v377_v10, %v379_v55  ;;  %v434_v32 = vld [vmem:[#allocation3 + $0x38] sm:$0xff]  ;;  %vm441_vm2 = vcmask 1043456  }
 0x14f   : > { %385 = vst [vmem:[#allocation3 + $0x20] sm:$0xf0] %v381_v11  ;;  %386 = vst [vmem:[#allocation3 + $0x28] sm:$0xf0] %v382_v12 }
 0x150   : > { %v401_v13 = vpop.permute.xlu1 %400 }
 0x151   : > { %v407_v15 = vsel %vm406_vm13, %v401_v13, %v403_v48  ;;  %v416_v16 = vpop.permute.xlu0 %415  ;;  %v430_v18 = vld [vmem:[#allocation3 + $0x18] sm:$0xff]  ;;  %v429_v23 = vld [vmem:[#allocation3 + $0x10] sm:$0xff] }
 0x152   : > { %411 = vst [vmem:[#allocation3 + $0x30] sm:$0xf0] %v407_v15  ;;  %v882_v24 = vpack.c.bf16 %v430_v18, %v428_v14  ;;  %v884_v25 = vpack.c.bf16 %v429_v23, %v427_v22 }
 0x154   : > { %v418_v26 = vpop.permute.xlu1 %417  ;;  %883 = vmatprep.subr.bf16.mxu0 %v882_v24 }
 0x155   : > { %v421_v27 = vsel %vm419_vm1, %v416_v16, %v418_v26  ;;  %v414_v29 = vpop.permute.xlu0 %413  ;;  %885 = vmatpush1.bf16.msra.mxu0 %v884_v25 }
 0x156   : > { %425 = vst [vmem:[#allocation3 + $0x48] sm:$0xf] %v421_v27  ;;  %v420_v30 = vsel %vm419_vm1, %v414_v29, %v416_v16  ;;  %v432_v31 = vld [vmem:[#allocation3 + $0x28] sm:$0xff]  ;;  %v431_v35 = vld [vmem:[#allocation3 + $0x20] sm:$0xff] }
 0x157   : > { %424 = vst [vmem:[#allocation3 + $0x40] sm:$0xf] %v420_v30  ;;  %v886_v34 = vpack.c.bf16 %v434_v32, %v432_v31 }
 0x159   : > { %887 = vmatprep.subr.bf16.mxu0 %v886_v34  ;;  %v433_v36 = vld [vmem:[#allocation3 + $0x30] sm:$0xff] }
 0x15a   : > { %v888_v37 = vpack.c.bf16 %v433_v36, %v431_v35 }
 0x15c   : > { %889 = vmatpush1.bf16.msra.mxu0 %v888_v37 }
 0x15d   : > { %v436_v38 = vld [vmem:[#allocation3 + $0x48] sm:$0xf] }
 0x15e   : > { %869 = vmatprep.subr.msk.mxu0 %vm441_vm2, %v436_v38  ;;  %v435_v39 = vld [vmem:[#allocation3 + $0x40] sm:$0xf] }
 0x160   : > { %870 = vmatpush1.msk.msra.mxu0 %vm441_vm2, %v435_v39 }
 0x161   : > { %871 = vmatmul.mubr.msk.f32.vlgmr.msra.gmra.mrb[0].mxu0 %vm437_vm0, %v426_v40 }
 0x165   : > { %v1314_v41 = vpop.permute.xlu1 %521 }
 0x166   : > { %v1316_v43 = vpop.permute.xlu0 %527 }
 0x234   : > { %v514_v42 = vpop.f32.mrb[0].mxu0 }
 0x235   : > { %v524_v44 = vmul.f32 %v1314_v41, %v514_v42  ;;  %v516_v45 = vpop.f32.mrb[1].mxu0 }
 0x236   : > { %v525_v46 = vmul.f32 %v1314_v41, %v516_v45 }
 0x237   : > { %v530_v47 = vadd.f32 %v1316_v43, %v524_v44 }
 0x238   : > { %v531_v48 = vadd.f32 %v1316_v43, %v525_v46 }
 0x239   : > { %v532_v49 = vmax.f32 %v530_v47, 0.0 }
 0x23a   : > { %v533_v50 = vmax.f32 %v531_v48, 0.0 }
 0x23c   : > { %v536_v51 = vcombine.low %v532_v49, %v533_v50 }
 0x23e   : > { %537 = vrot.lane.b32.xlu1 %v536_v51, %s1065_s8  ;;  %s881_s8 = sshll.u32 %s1123_s19, 7  ;;  %s1076_s19 = smov [#allocation7]  }
 0x2b0   : > { %v538_v52 = vpop.permute.xlu1 %537 }
 0x2b1   : > { %v539_v53 = vrot.slane %v538_v52, 4 }
 0x2b3   : > { %v540_v54 = vsel %vm272_vm3, %v539_v53, %v538_v52  ;;  %544 = vst.msk [vmem:[#allocation2 + $0x8] sm:$0xf] %vm280_vm4, %v539_v53  ;;  %vm1472_vm3 = vcmask 785408   ;;  %vm1473_vm4 = vcmask 916480  }
 0x2b4   : > { %543 = vst.msk [vmem:[#allocation2] sm:$0xff] %vm1221_vm5, %v540_v54  ;;  %vm1474_vm5 = vmmov %vm1473_vm4 }
 0x2ba   : > { %v546_v55 = vld [vmem:[#allocation2 + $0x8] sm:$0xf] }
 0x2bb   : > { %610 = vrot.lane.b32.xlu1 %v546_v55, %s1066_s26  ;;  %v556_v56 = vsel %vm1239_vm8, %v546_v55, 0.0  ;;  %v545_v57 = vld [vmem:[#allocation2] sm:$0xff]  ;;  %v553_v20 = vsel %vm1234_vm7, %v546_v55, 0.0  ;;  %v560_v60 = vcombine.low %v546_v55, %v546_v55  ;;  %vm1476_vm7 = vcmask 900096  }
 0x2bc   : > { %580 = vrot.lane.b32.xlu0 %v556_v56, %s1069_s14  ;;  %v549_v58 = vcombine.high %v545_v57, %v545_v57  ;;  %v551_v59 = vsel %vm1229_vm6, %v545_v57, 0.0  ;;  %v559_v17 = vcombine.low %v545_v57, %v545_v57  ;;  %v554_v21 = vsel %vm1261_vm10, %v545_v57, 0.0  ;;  %vm1475_vm6 = vmmov %vm1472_vm3 }
 0x2bd   : > { %557 = vst [vmem:[#allocation3] sm:$0xf] %v551_v59  ;;  %v620_v61 = vrot.slane %v556_v56, 4  ;;  %v593_v19 = vrot.slane %v553_v20, 4  ;;  %v591_v63 = vrot.slane %v551_v59, 4  ;;  %v618_v0 = vrot.slane %v554_v21, 4  ;;  %vm1477_vm8 = vmmov %vm1476_vm7 }
 0x2be   : > { %v552_v7 = vsel %vm1243_vm9, %v549_v58, 0.0  ;;  %v555_v62 = vsel %vm1270_vm11, %v549_v58, 0.0 }
 0x2bf   : > { %563 = vrot.lane.b32.xlu1 %v545_v57, %s1067_s10  ;;  %558 = vst [vmem:[#allocation3 + $0x8] sm:$0xf] %v552_v7  ;;  %v592_v28 = vrot.slane %v552_v7, 4  ;;  %v619_v2 = vrot.slane %v555_v62, 4 }
 0x2c0   : > { %647 = vrot.lane.b32.xlu0 %v545_v57, %s1070_s20 }
 0x2c3   : > { %637 = vrot.lane.b32.xlu1 %v553_v20, %s1068_s12 }
 0x2c4   : > { %606 = vrot.lane.b32.xlu0 %v545_v57, %s1066_s26 }
 0x2c7   : > { %649 = vrot.lane.b32.xlu1 %v560_v60, %s1070_s20 }
 0x2c8   : > { %565 = vrot.lane.b32.xlu0 %v560_v60, %s1067_s10 }
 0x2cb   : > { %561 = vrot.lane.b32.xlu1 %v559_v17, %s1067_s10 }
 0x2cc   : > { %576 = vrot.lane.b32.xlu0 %v554_v21, %s1069_s14 }
 0x2cf   : > { %625 = vrot.lane.b32.xlu1 %v620_v61, %s1071_s22  ;;  %v669_v61 = vld [vmem:[%s1444_s2] sm:$0xf] }
 0x2d0   : > { %598 = vrot.lane.b32.xlu0 %v593_v19, %s1072_s23 }
 0x2d3   : > { %578 = vrot.lane.b32.xlu1 %v555_v62, %s1069_s14 }
 0x2d4   : > { %608 = vrot.lane.b32.xlu0 %v549_v58, %s1066_s26  ;;  %s213_s26 = scalar_lea.vmem [#allocation7], %s867_s9  ;;  %s999_s9 = sshll.u32 %s1076_s19, 4  ;;  %s1000_s9 = int_to_ptr.vmem [resolvable:$false] %s999_s9 }
 0x2d5   : > { %s790_s10 = sshll.u32 %s213_s26, 4  ;;  %s1400_s10 = int_to_ptr.vmem [resolvable:$true] %s790_s10 }
 0x2d6   : > { %p1002_p7 = scmp.lt.s32.totalorder %s1400_s10, %s1000_s9 }
 0x2d7   : > { %594 = vrot.lane.b32.xlu1 %v591_v63, %s1072_s23 }
 0x2d8   : > { %635 = vrot.lane.b32.xlu0 %v552_v7, %s1068_s12 }
 0x2db   : > { %596 = vrot.lane.b32.xlu1 %v592_v28, %s1072_s23  ;;  %v764_v28 = vcombine.high %v1217_v1, %v1217_v1  ;;  %s995_s23 = scalar_lea.vmem %s1400_s10, 128 }
 0x2dc   : > { %633 = vrot.lane.b32.xlu0 %v551_v59, %s1068_s12  ;;  %p996_p6 = scmp.ne.s32.totalorder %s1400_s10, %s995_s23 }
 0x2de   : > { %p997_p12 = pnand %p996_p6, %p1478_p11 }
 0x2df   : > { %621 = vrot.lane.b32.xlu1 %v618_v0, %s1071_s22 }
 0x2e0   : > { %623 = vrot.lane.b32.xlu0 %v619_v2, %s1071_s22  ;;  %s776_s22 = scalar_lea.sflag [#allocation6], %s1207_s7  ;;  %p998_p13 = pneg %p997_p12 }
 0x2e3   : > { %645 = vrot.lane.b32.xlu1 %v559_v17, %s1070_s20  ;;  %s1398_s20 = scalar_lea.hbm %s1446_s4, %s881_s8 }
 0x2e4   : > { %659 = vrot.lane.b32.xlu0 %v555_v62, %s1073_s25 }
 0x2e7   : > { %661 = vrot.lane.b32.xlu1 %v556_v56, %s1073_s25 }
 0x2e8   : > { %657 = vrot.lane.b32.xlu0 %v554_v21, %s1073_s25  ;;  %s1001_s25 = scalar_lea.vmem %s1000_s9, 256 }
 0x2e9   : > { %p1003_p10 = scmp.lt.s32.totalorder %s1001_s25, %s995_s23 }
 0x2eb   : > { %p1004_p2 = por %p1003_p10, %p1002_p7 }
 0x2ed   : > { %p1005_p4 = pnand %p1004_p2, %p998_p13 }
 0x32d   : > { %v611_v33 = vpop.permute.xlu1 %610 }
 0x32e   : > { %v581_v3 = vpop.permute.xlu0 %580 }
 0x331   : > { %v564_v4 = vpop.permute.xlu1 %563 }
 0x332   : > { %v648_v5 = vpop.permute.xlu0 %647 }
 0x335   : > { %v638_v6 = vpop.permute.xlu1 %637 }
 0x336   : > { %v607_v8 = vpop.permute.xlu0 %606 }
 0x339   : > { %v650_v9 = vpop.permute.xlu1 %649 }
 0x33a   : > { %v652_v10 = vsel %vm406_vm13, %v648_v5, %v650_v9  ;;  %v566_v11 = vpop.permute.xlu0 %565 }
 0x33b   : > { %656 = vst [vmem:[#allocation3 + $0x38] sm:$0xf0] %v652_v10  ;;  %v568_v12 = vsel %vm316_vm12, %v564_v4, %v566_v11 }
 0x33c   : > { %572 = vst [vmem:[#allocation3 + $0x8] sm:$0xf0] %v568_v12 }
 0x33d   : > { %v562_v13 = vpop.permute.xlu1 %561 }
 0x33e   : > { %v567_v14 = vsel %vm316_vm12, %v562_v13, %v564_v4  ;;  %v577_v15 = vpop.permute.xlu0 %576 }
 0x33f   : > { %571 = vst [vmem:[#allocation3] sm:$0xf0] %v567_v14 }
 0x341   : > { %v626_v16 = vpop.permute.xlu1 %625 }
 0x342   : > { %v599_v18 = vpop.permute.xlu0 %598 }
 0x343   : > { %v671_v45 = vld [vmem:[#allocation3 + $0x8] sm:$0xff] }
 0x345   : > { %v579_v22 = vpop.permute.xlu1 %578 }
 0x346   : > { %v582_v23 = vsel %vm332_vm14, %v577_v15, %v579_v22  ;;  %v583_v24 = vsel %vm332_vm14, %v579_v22, %v581_v3  ;;  %v609_v25 = vpop.permute.xlu0 %608  ;;  %v670_v49 = vld [vmem:[#allocation3] sm:$0xff] }
 0x347   : > { %586 = vst [vmem:[#allocation3 + $0x10] sm:$0xf] %v582_v23  ;;  %587 = vst [vmem:[#allocation3 + $0x18] sm:$0xf] %v583_v24  ;;  %v612_v26 = vsel %vm364_vm15, %v607_v8, %v609_v25  ;;  %v613_v27 = vsel %vm364_vm15, %v609_v25, %v611_v33 }
 0x348   : > { %616 = vst [vmem:[#allocation3 + $0x20] sm:$0xf] %v612_v26  ;;  %617 = vst [vmem:[#allocation3 + $0x28] sm:$0xf] %v613_v27 }
 0x349   : > { %v595_v29 = vpop.permute.xlu1 %594 }
 0x34a   : > { %v636_v30 = vpop.permute.xlu0 %635 }
 0x34b   : > { %v640_v31 = vsel %vm1472_vm3, %v636_v30, %v638_v6 }
 0x34c   : > { %644 = vst [vmem:[#allocation3 + $0x38] sm:$0xf] %v640_v31 }
 0x34d   : > { %v597_v32 = vpop.permute.xlu1 %596 }
 0x34e   : > { %v600_v34 = vsel %vm1473_vm4, %v595_v29, %v597_v32  ;;  %v601_v35 = vsel %vm1474_vm5, %v597_v32, %v599_v18  ;;  %v634_v36 = vpop.permute.xlu0 %633 }
 0x34f   : > { %604 = vst [vmem:[#allocation3 + $0x10] sm:$0xf0] %v600_v34  ;;  %605 = vst [vmem:[#allocation3 + $0x18] sm:$0xf0] %v601_v35  ;;  %v639_v37 = vsel %vm1475_vm6, %v634_v36, %v636_v30 }
 0x350   : > { %643 = vst [vmem:[#allocation3 + $0x30] sm:$0xf] %v639_v37 }
 0x351   : > { %v622_v38 = vpop.permute.xlu1 %621 }
 0x352   : > { %v624_v39 = vpop.permute.xlu0 %623 }
 0x353   : > { %v627_v40 = vsel %vm1476_vm7, %v622_v38, %v624_v39  ;;  %v628_v42 = vsel %vm1477_vm8, %v624_v39, %v626_v16  ;;  %v677_v58 = vld [vmem:[#allocation3 + $0x38] sm:$0xff] }
 0x354   : > { %631 = vst [vmem:[#allocation3 + $0x20] sm:$0xf0] %v627_v40  ;;  %632 = vst [vmem:[#allocation3 + $0x28] sm:$0xf0] %v628_v42 }
 0x355   : > { %v646_v44 = vpop.permute.xlu1 %645 }
 0x356   : > { %v651_v46 = vsel %vm406_vm13, %v646_v44, %v648_v5  ;;  %v660_v47 = vpop.permute.xlu0 %659  ;;  %v673_v48 = vld [vmem:[#allocation3 + $0x18] sm:$0xff]  ;;  %v672_v50 = vld [vmem:[#allocation3 + $0x10] sm:$0xff] }
 0x357   : > { %655 = vst [vmem:[#allocation3 + $0x30] sm:$0xf0] %v651_v46  ;;  %v890_v51 = vpack.c.bf16 %v673_v48, %v671_v45  ;;  %v892_v52 = vpack.c.bf16 %v672_v50, %v670_v49 }
 0x359   : > { %v662_v53 = vpop.permute.xlu1 %661  ;;  %891 = vmatprep.subr.bf16.mxu1 %v890_v51 }
 0x35a   : > { %v664_v54 = vsel %vm419_vm1, %v660_v47, %v662_v53  ;;  %v658_v55 = vpop.permute.xlu0 %657  ;;  %893 = vmatpush1.bf16.msra.mxu1 %v892_v52 }
 0x35b   : > { %668 = vst [vmem:[#allocation3 + $0x48] sm:$0xf] %v664_v54  ;;  %v663_v56 = vsel %vm419_vm1, %v658_v55, %v660_v47  ;;  %v675_v57 = vld [vmem:[#allocation3 + $0x28] sm:$0xff]  ;;  %v674_v7 = vld [vmem:[#allocation3 + $0x20] sm:$0xff] }
 0x35c   : > { %667 = vst [vmem:[#allocation3 + $0x40] sm:$0xf] %v663_v56  ;;  %v894_v59 = vpack.c.bf16 %v677_v58, %v675_v57 }
 0x35e   : > { %895 = vmatprep.subr.bf16.mxu1 %v894_v59  ;;  %v676_v20 = vld [vmem:[#allocation3 + $0x30] sm:$0xff] }
 0x35f   : > { %v896_v60 = vpack.c.bf16 %v676_v20, %v674_v7 }
 0x361   : > { %897 = vmatpush1.bf16.msra.mxu1 %v896_v60 }
 0x362   : > { %v679_v17 = vld [vmem:[#allocation3 + $0x48] sm:$0xf] }
 0x363   : > { %872 = vmatprep.subr.msk.mxu1 %vm441_vm2, %v679_v17  ;;  %v678_v21 = vld [vmem:[#allocation3 + $0x40] sm:$0xf] }
 0x365   : > { %873 = vmatpush1.msk.msra.mxu1 %vm441_vm2, %v678_v21 }
 0x366   : > { %874 = vmatmul.mubr.msk.f32.vlgmr.msra.gmra.mrb[0].mxu1 %vm437_vm0, %v669_v61 }
 0x439   : > { %v755_v19 = vpop.f32.mrb[0].mxu1 }
 0x43a   : > { %v760_v62 = vmul.f32 %v755_v19, %v1314_v41  ;;  %v757_v63 = vpop.f32.mrb[1].mxu1 }
 0x43b   : > { %v761_v0 = vmul.f32 %v757_v63, %v1314_v41 }
 0x43c   : > { %v762_v2 = vadd.f32 %v760_v62, %v1316_v43 }
 0x43d   : > { %v763_v33 = vadd.f32 %v761_v0, %v1316_v43 }
 0x43e   : > { %v766_v3 = vadd.f32 %v762_v2, %v1217_v1 }
 0x43f   : > { %v767_v4 = vadd.f32 %v764_v28, %v763_v33 }
 0x440   : > { %v768_v5 = vmax.f32 %v766_v3, 0.0 }
 0x441   : > { %v769_v6 = vmax.f32 %v767_v4, 0.0 }
 0x443   : > { %v772_v8 = vcombine.low %v768_v5, %v769_v6 }
 0x445   : > { %774 = vst [vmem:[%s213_s26] sm:$0xff] %v772_v8 }
 0x446   : > { %1008 = shalt.err (!%p1005_p4)
}
 0x447   : > { %s1009_s7 = scalar_lea.hbm %s1398_s20, 128  ;;  %s1013_s5 = scalar_lea.hbm %s1446_s4, 256 }
 0x448   : > { %p1010_p5 = scmp.ne.s32.totalorder %s1398_s20, %s1009_s7  ;;  %p1014_p0 = scmp.lt.u32.totalorder %s1398_s20, %s1446_s4 }
 0x449   : > { %p1015_p1 = scmp.lt.u32.totalorder %s1013_s5, %s1009_s7  ;;  %p1017_p6 = scmp.lt.u32.totalorder %s1009_s7, %s1398_s20 }
 0x44a   : > { %p1011_p8 = pnand %p1010_p5, %p1478_p11 }
 0x44b   : > { %p1016_p3 = por %p1015_p1, %p1014_p0 }
 0x44c   : > { %p1012_p9 = pneg %p1011_p8 }
 0x44d   : > { %p1018_p12 = por %p1017_p6, %p1016_p3 }
 0x44f   : > { %p1019_p13 = pnand %p1018_p12, %p1012_p9 }
 0x451   : > { %1022 = shalt.err (!%p1019_p13)
}
 0x452   : > { %900 = dma.vmem_to_hbm [thread:$0]  (%p1478_p11), %s1400_s10, 128, %s1398_s20, %s776_s22  }
 0x453 PF: > { %s802_s11 = sand.u32 1, %s1049_s15   ;;  %p1479_p7 = scmp.ne.s32.totalorder %s1454_s28, 0 }
 0x454   : > { %p1480_p10 = scmp.ge.s32.totalorder %s1061_s18, 2  ;;  %s803_s8 = scalar_lea.sflag [#allocation6], %s802_s11 }
 0x456   : > { %p907_p2 = pnand %p1480_p10, %p1479_p7 }
 0x458   : > { %1044 = dma.done.wait (!%p907_p2), %s803_s8, 128  }
 0x459   : > { %1046 = vsyncadd (!%p907_p2), %s803_s8, 4294967168  ;;  %p17_p4 = scmp.ge.s32.totalorder %s1127_s21, 4   ;;  %s1481_s15 = smov %s1053_s16 }
 0x45a   : > { %s1482_s16 = smov %s1057_s17  ;;  %s1483_s17 = smov %s1139_s24 }
 0x45b   : > { %s1484_s18 = smov %s1127_s21  ;;  %19 = sbr.rel (!%p17_p4) target bundleno = 5 (0x5), region = 81 }
 0x462   :  { %808 = vsyncpa [#allocation5], 1 }
 0x463   :  { %810 = vsyncpa [#allocation5 + $0x1], 1 }
 0x464   :  { %811 = vsyncpa [#allocation6], 1 }
 0x465   :  { %813 = vsyncpa [#allocation6 + $0x1], 1 }

</bundles_post_ra>
